<compile_context>
chip_gen: v7x
topology: tpu7x:2x2x1
jax: 0.10.0
libtpu: 0.0.40
codegen_flags: <defaults>
</compile_context>

<pallas_src>
import functools

import jax
import jax.numpy as jnp
from jax import lax
from jax.experimental import pallas as pl
from jax.experimental.pallas import tpu as pltpu


def _round_up(x, m):
    return (x + m - 1) // m * m


# ------------------------------- Pallas kernel -------------------------------

def _block_kernel(x_ref, masks_ref, w1_ref, s1_ref, w2_ref, s2_ref, o_ref, *, W):
    """Fused conv1+BN+ReLU -> conv2+BN+residual+ReLU for one batch sub-block.

    x_ref:     (1, Cp1, L)      channel-padded input, L = Nb*H*W (batch folded
                                into lanes, channels on sublanes)
    masks_ref: (8, L)           f32 0/1 rows:
                                [seam_hi, seam_lo, not_hi, not_lo,
                                 valid_dn, valid_up, 0, 0]
    w1_ref:    (3, Cp2, 3*Cp1)  BN-folded stage-1 weights, bf16, dh-major groups
    s1_ref:    (Cp2, 1)         folded stage-1 shift (bias*scale + bn_shift)
    w2_ref:    (3, CpO, 3*Cp2)  BN-folded stage-2 weights, bf16
    s2_ref:    (CpO, 1)         folded stage-2 shift
    o_ref:     (1, CpO, L)      padded output (CpO == Cp1 since Cout == Cin)
    """
    x = x_ref[0]                                            # (Cp1, L) f32
    L = x.shape[1]

    m = masks_ref[...]                                       # (8, L)
    seam_hi, seam_lo = m[0:1], m[1:2]                        # periodic-W seams
    not_hi, not_lo = m[2:3], m[3:4]
    valid_dn, valid_up = m[4:5], m[5:6]                      # zero-pad-H validity

    def dw_planes(z):
        # Seam-corrected copies for dw = -1, 0, +1 (blend hoisted out of the
        # per-tap loop): 4 XLU rolls + 2 blends per stage, built once and
        # reused by all three dh groups.
        zm = (pltpu.roll(z, 1, axis=1) * not_lo
              + pltpu.roll(z, (L - W + 1) % L, axis=1) * seam_lo)      # dw=-1
        zp = (pltpu.roll(z, L - 1, axis=1) * not_hi
              + pltpu.roll(z, (W - 1) % L, axis=1) * seam_hi)          # dw=+1
        return zm, z, zp

    def conv_stage(z, w_ref, s_ref):
        zm, zc, zp = dw_planes(z)

        def dh_group(dh):
            # Tap(dh, dw)[c, (h,w)] = z[c, h+dh, (w+dw) mod W], zero if h+dh
            # is outside [0, H).  dw correction already applied; only a lane
            # roll by +-W plus a 0/1 validity mask remains.
            if dh == 0:
                g = (zm, zc, zp)
            elif dh > 0:
                g = tuple(pltpu.roll(p, (L - W) % L, axis=1) * valid_dn
                          for p in (zm, zc, zp))
            else:
                g = tuple(pltpu.roll(p, W % L, axis=1) * valid_up
                          for p in (zm, zc, zp))
            # (3*C, L), bf16 for the MXU (f32 accumulation in the dot).
            return jnp.concatenate(g, axis=0).astype(jnp.bfloat16)

        # Three accumulating MXU matmuls (one per dh group) instead of one big
        # 9-tap concat: lower peak vreg pressure, no concat copy.
        y = jnp.dot(w_ref[0], dh_group(-1), preferred_element_type=jnp.float32)
        y = y + jnp.dot(w_ref[1], dh_group(0), preferred_element_type=jnp.float32)
        y = y + jnp.dot(w_ref[2], dh_group(1), preferred_element_type=jnp.float32)
        return y + s_ref[...]                                 # folded bias + BN

    h1 = jnp.maximum(conv_stage(x, w1_ref, s1_ref), 0.0)      # (Cp2, L), VMEM only
    # Residual add on the full padded tile (CpO == Cp1; padded rows are zero).
    y2 = conv_stage(h1, w2_ref, s2_ref) + x
    o_ref[0] = jnp.maximum(y2, 0.0).astype(o_ref.dtype)


# ------------------------------- host wrapper --------------------------------

def _fold_params(w_oihw, bias, bn_scale, bn_shift, cin_pad, cout_pad):
    """Fold BatchNorm into conv weights; pack as (KH, cout_pad, KW*cin_pad) bf16."""
    cout, cin, kh, kw = w_oihw.shape
    w = w_oihw * bn_scale[:, None, None, None]
    w = jnp.pad(w, ((0, cout_pad - cout), (0, cin_pad - cin), (0, 0), (0, 0)))
    # Group order = dh (kh); within a group: dw (kw) major, then ci -- must
    # match the dh_group / concat order in-kernel.
    wmat = jnp.transpose(w, (2, 0, 3, 1)).reshape(kh, cout_pad, kw * cin_pad)
    shift = jnp.pad(bias * bn_scale + bn_shift, (0, cout_pad - cout))
    return wmat.astype(jnp.bfloat16), shift.reshape(cout_pad, 1).astype(jnp.float32)


@jax.jit
def block_periodic_shift_conv2d1(x_nchw, params):
    """out = relu(bn2(conv2(relu(bn1(conv1(x))))) + x), NCHW in/out."""
    (w1, b1, s1, t1, w2, b2, s2, t2) = params
    N, C, H, W = x_nchw.shape
    Cmid, _, KH, KW = w1.shape
    Cout = w2.shape[0]
    assert Cout == C, "residual add requires output_channels == input_channels"
    assert (KH, KW) == (3, 3), "specialised to the module default 3x3 kernel"
    # TODO(synk): generalise the boundary masks for kernel sizes other than 3x3.

    HW = H * W
    Cp1 = _round_up(C, 8)          # sublane-aligned channel counts so the
    Cp2 = _round_up(Cmid, 8)       # in-kernel patch concat is tile-aligned
    CpO = Cp1                      # Cout == C -> same padded count

    # Batch blocking: >= 2 parallel grid steps when N >= 2 (keeps both v7x
    # TensorCores busy; ~no-op cost on single-TC v5e/v6e), remaining batch
    # elements folded into the lane axis (widens the matmul N dim).
    G = 2 if N >= 2 else 1
    Nb = -(-N // G)
    Npad = G * Nb
    L = Nb * HW

    w1m, sh1 = _fold_params(w1, b1, s1, t1, Cp1, Cp2)
    w2m, sh2 = _fold_params(w2, b2, s2, t2, Cp2, CpO)

    # Channel-major, batch-folded layout: (G, Cp1, Nb*HW), spatial on lanes.
    x = x_nchw.reshape(N, C, HW).astype(jnp.float32)
    x = jnp.pad(x, ((0, Npad - N), (0, Cp1 - C), (0, 0)))
    x = x.reshape(G, Nb, Cp1, HW).transpose(0, 2, 1, 3).reshape(G, Cp1, L)

    # Boundary masks (f32 0/1), padded to a full 8-sublane tile.
    lane = jnp.arange(L)
    hw = lane % HW
    w_idx, h_idx = hw % W, hw // W
    zeros = jnp.zeros((L,), jnp.float32)
    masks = jnp.stack([
        (w_idx == W - 1).astype(jnp.float32),   # seam_hi
        (w_idx == 0).astype(jnp.float32),       # seam_lo
        (w_idx != W - 1).astype(jnp.float32),   # not_hi
        (w_idx != 0).astype(jnp.float32),       # not_lo
        (h_idx < H - 1).astype(jnp.float32),    # valid_dn
        (h_idx >= 1).astype(jnp.float32),       # valid_up
        zeros, zeros,
    ], axis=0)                                   # (8, L)

    kernel = functools.partial(_block_kernel, W=W)

    out = pl.pallas_call(
        kernel,
        out_shape=jax.ShapeDtypeStruct((G, CpO, L), jnp.float32),
        grid=(G,),
        in_specs=[
            pl.BlockSpec((1, Cp1, L), lambda g: (g, 0, 0)),
            pl.BlockSpec((8, L), lambda g: (0, 0)),
            pl.BlockSpec((3, Cp2, 3 * Cp1), lambda g: (0, 0, 0)),
            pl.BlockSpec((Cp2, 1), lambda g: (0, 0)),
            pl.BlockSpec((3, CpO, 3 * Cp2), lambda g: (0, 0, 0)),
            pl.BlockSpec((CpO, 1), lambda g: (0, 0)),
        ],
        out_specs=pl.BlockSpec((1, CpO, L), lambda g: (g, 0, 0)),
        compiler_params=pltpu.CompilerParams(
            dimension_semantics=("parallel",)),
    )(x, masks, w1m, sh1, w2m, sh2)

    # Un-fold the batch, drop channel/batch padding (free layout plumbing).
    out = out.reshape(G, CpO, Nb, HW).transpose(0, 2, 1, 3).reshape(Npad, CpO, HW)
    return out[:N, :Cout].reshape(N, Cout, H, W)


# ------------------------------ pure-JAX reference ---------------------------

def _ref_block(x, w1_oihw, b1, s1, t1, w2_oihw, b2, s2, t2):
    def pconv(z, w, b):
        pw = (w.shape[3] - 1) // 2
        zp = jnp.concatenate([z[..., -pw:], z, z[..., :pw]], axis=-1)
        y = lax.conv_general_dilated(zp, w, (1, 1), [(1, 1), (0, 0)],
                                     dimension_numbers=("NCHW", "OIHW", "NCHW"))
        return y + b[None, :, None, None]

    def bn(y, s, t):
        return y * s[None, :, None, None] + t[None, :, None, None]

    h = jnp.maximum(bn(pconv(x, w1_oihw, b1), s1, t1), 0.0)
    o = bn(pconv(h, w2_oihw, b2), s2, t2) + x
    return jnp.maximum(o, 0.0)


# ----------------------------------- main ------------------------------------

if __name__ == "__main__":
    N, C, H, W = 2, 4, 16, 16       # input_channels == output_channels (residual)
    Cmid = 8                        # inside_channels
    KH, KW = 3, 3
    eps = 1e-5

    key = jax.random.PRNGKey(0)
    kx, k1, k2, kb1, kb2 = jax.random.split(key, 5)

    x = jax.random.normal(kx, (N, C, H, W), jnp.float32)

    # Deterministic parameter init (PyTorch conv weights are OIHW).
    w1_oihw = jax.random.normal(k1, (Cmid, C, KH, KW), jnp.float32) / (C * KH * KW) ** 0.5
    w2_oihw = jax.random.normal(k2, (C, Cmid, KH, KW), jnp.float32) / (Cmid * KH * KW) ** 0.5
    b1 = 0.01 * jax.random.normal(kb1, (Cmid,), jnp.float32)
    b2 = 0.01 * jax.random.normal(kb2, (C,), jnp.float32)

    # BatchNorm2d (inference mode, default init) as per-channel scale/shift.
    s1 = jnp.ones((Cmid,), jnp.float32) / jnp.sqrt(1.0 + eps)
    t1 = jnp.zeros((Cmid,), jnp.float32)
    s2 = jnp.ones((C,), jnp.float32) / jnp.sqrt(1.0 + eps)
    t2 = jnp.zeros((C,), jnp.float32)

    params = (w1_oihw, b1, s1, t1, w2_oihw, b2, s2, t2)
    out = block_periodic_shift_conv2d1(x, params)
    out = jax.block_until_ready(out)

    ref = _ref_block(x, w1_oihw, b1, s1, t1, w2_oihw, b2, s2, t2)
    assert out.shape == x.shape, (out.shape, x.shape)
    max_err = float(jnp.max(jnp.abs(out - ref)))
    # bf16 MXU operands (f32 accumulation) -> relaxed tolerance vs f32 reference.
    assert jnp.allclose(out, ref, atol=5e-2, rtol=5e-2), max_err

    print("KERNEL_OK")
</pallas_src>

<mosaic_0001>
module attributes {stable_mosaic.version = 11 : i64} {
  func.func @_block_kernel(%arg0: i32, %arg1: memref<1x8x256xf32, #tpu.memory_space<vmem>>, %arg2: memref<8x256xf32, #tpu.memory_space<vmem>>, %arg3: memref<3x8x24xbf16, #tpu.memory_space<vmem>>, %arg4: memref<8x1xf32, #tpu.memory_space<vmem>>, %arg5: memref<3x8x24xbf16, #tpu.memory_space<vmem>>, %arg6: memref<8x1xf32, #tpu.memory_space<vmem>>, %arg7: memref<1x8x256xf32, #tpu.memory_space<vmem>>) attributes {dimension_semantics = [#tpu.dimension_semantics<parallel>], iteration_bounds = array<i64: 2>, scalar_prefetch = 0 : i64, scratch_operands = 0 : i64, tpu.core_type = #tpu.core_type<tc>, window_params = [{transform_indices = @transform_0, window_bounds = array<i64: 1, 8, 256>}, {pipeline_mode = #tpu.pipeline_mode<synchronous>, transform_indices = @transform_1, window_bounds = array<i64: 8, 256>}, {pipeline_mode = #tpu.pipeline_mode<synchronous>, transform_indices = @transform_2, window_bounds = array<i64: 3, 8, 24>}, {pipeline_mode = #tpu.pipeline_mode<synchronous>, transform_indices = @transform_3, window_bounds = array<i64: 8, 1>}, {pipeline_mode = #tpu.pipeline_mode<synchronous>, transform_indices = @transform_4, window_bounds = array<i64: 3, 8, 24>}, {pipeline_mode = #tpu.pipeline_mode<synchronous>, transform_indices = @transform_5, window_bounds = array<i64: 8, 1>}, {transform_indices = @transform_6, window_bounds = array<i64: 1, 8, 256>}]} {
    %c0 = arith.constant 0 : index
    %c0_0 = arith.constant 0 : index
    %c0_1 = arith.constant 0 : index
    %0 = vector.load %arg1[%c0, %c0_0, %c0_1] : memref<1x8x256xf32, #tpu.memory_space<vmem>>, vector<1x8x256xf32>
    %1 = vector.shape_cast %0 : vector<1x8x256xf32> to vector<8x256xf32>
    %c0_2 = arith.constant 0 : index
    %c0_3 = arith.constant 0 : index
    %2 = vector.load %arg2[%c0_2, %c0_3] : memref<8x256xf32, #tpu.memory_space<vmem>>, vector<8x256xf32>
    %3 = vector.extract_strided_slice %2 {offsets = [0, 0], sizes = [1, 256], strides = [1, 1]} : vector<8x256xf32> to vector<1x256xf32>
    %4 = vector.extract_strided_slice %2 {offsets = [1, 0], sizes = [1, 256], strides = [1, 1]} : vector<8x256xf32> to vector<1x256xf32>
    %5 = vector.extract_strided_slice %2 {offsets = [2, 0], sizes = [1, 256], strides = [1, 1]} : vector<8x256xf32> to vector<1x256xf32>
    %6 = vector.extract_strided_slice %2 {offsets = [3, 0], sizes = [1, 256], strides = [1, 1]} : vector<8x256xf32> to vector<1x256xf32>
    %7 = vector.extract_strided_slice %2 {offsets = [4, 0], sizes = [1, 256], strides = [1, 1]} : vector<8x256xf32> to vector<1x256xf32>
    %8 = vector.extract_strided_slice %2 {offsets = [5, 0], sizes = [1, 256], strides = [1, 1]} : vector<8x256xf32> to vector<1x256xf32>
    %c1_i32 = arith.constant 1 : i32
    %9 = tpu.dynamic_rotate %1 by %c1_i32 dim 1 : vector<8x256xf32>, i32 -> vector<8x256xf32>
    %10 = vector.broadcast %6 : vector<1x256xf32> to vector<8x256xf32>
    %11 = arith.mulf %9, %10 : vector<8x256xf32>
    %c241_i32 = arith.constant 241 : i32
    %12 = tpu.dynamic_rotate %1 by %c241_i32 dim 1 : vector<8x256xf32>, i32 -> vector<8x256xf32>
    %13 = vector.broadcast %4 : vector<1x256xf32> to vector<8x256xf32>
    %14 = arith.mulf %12, %13 : vector<8x256xf32>
    %15 = arith.addf %11, %14 : vector<8x256xf32>
    %c255_i32 = arith.constant 255 : i32
    %16 = tpu.dynamic_rotate %1 by %c255_i32 dim 1 : vector<8x256xf32>, i32 -> vector<8x256xf32>
    %17 = vector.broadcast %5 : vector<1x256xf32> to vector<8x256xf32>
    %18 = arith.mulf %16, %17 : vector<8x256xf32>
    %c15_i32 = arith.constant 15 : i32
    %19 = tpu.dynamic_rotate %1 by %c15_i32 dim 1 : vector<8x256xf32>, i32 -> vector<8x256xf32>
    %20 = vector.broadcast %3 : vector<1x256xf32> to vector<8x256xf32>
    %21 = arith.mulf %19, %20 : vector<8x256xf32>
    %22 = arith.addf %18, %21 : vector<8x256xf32>
    %c0_4 = arith.constant 0 : index
    %c0_5 = arith.constant 0 : index
    %c0_6 = arith.constant 0 : index
    %23 = vector.load %arg3[%c0_4, %c0_5, %c0_6] : memref<3x8x24xbf16, #tpu.memory_space<vmem>>, vector<1x8x24xbf16>
    %24 = vector.shape_cast %23 : vector<1x8x24xbf16> to vector<8x24xbf16>
    %c16_i32 = arith.constant 16 : i32
    %25 = tpu.dynamic_rotate %15 by %c16_i32 dim 1 : vector<8x256xf32>, i32 -> vector<8x256xf32>
    %26 = vector.broadcast %8 : vector<1x256xf32> to vector<8x256xf32>
    %27 = arith.mulf %25, %26 : vector<8x256xf32>
    %c16_i32_7 = arith.constant 16 : i32
    %28 = tpu.dynamic_rotate %1 by %c16_i32_7 dim 1 : vector<8x256xf32>, i32 -> vector<8x256xf32>
    %29 = vector.broadcast %8 : vector<1x256xf32> to vector<8x256xf32>
    %30 = arith.mulf %28, %29 : vector<8x256xf32>
    %c16_i32_8 = arith.constant 16 : i32
    %31 = tpu.dynamic_rotate %22 by %c16_i32_8 dim 1 : vector<8x256xf32>, i32 -> vector<8x256xf32>
    %32 = vector.broadcast %8 : vector<1x256xf32> to vector<8x256xf32>
    %33 = arith.mulf %31, %32 : vector<8x256xf32>
    %34 = tpu.concatenate %27, %30, %33 in 0 : vector<8x256xf32>, vector<8x256xf32>, vector<8x256xf32> -> vector<24x256xf32>
    %35 = arith.truncf %34 : vector<24x256xf32> to vector<24x256xbf16>
    %cst = arith.constant dense<0.000000e+00> : vector<8x256xf32>
    %36 = tpu.matmul %24, %35, %cst {dimension_numbers = #tpu.dot_dimension_numbers<[1], [0], [0], [1], [0, 0, 1, 1], [], []>} : vector<8x24xbf16>, vector<24x256xbf16>, vector<8x256xf32> -> vector<8x256xf32>
    %c1 = arith.constant 1 : index
    %c0_9 = arith.constant 0 : index
    %c0_10 = arith.constant 0 : index
    %37 = vector.load %arg3[%c1, %c0_9, %c0_10] : memref<3x8x24xbf16, #tpu.memory_space<vmem>>, vector<1x8x24xbf16>
    %38 = vector.shape_cast %37 : vector<1x8x24xbf16> to vector<8x24xbf16>
    %39 = tpu.concatenate %15, %1, %22 in 0 : vector<8x256xf32>, vector<8x256xf32>, vector<8x256xf32> -> vector<24x256xf32>
    %40 = arith.truncf %39 : vector<24x256xf32> to vector<24x256xbf16>
    %cst_11 = arith.constant dense<0.000000e+00> : vector<8x256xf32>
    %41 = tpu.matmul %38, %40, %cst_11 {dimension_numbers = #tpu.dot_dimension_numbers<[1], [0], [0], [1], [0, 0, 1, 1], [], []>} : vector<8x24xbf16>, vector<24x256xbf16>, vector<8x256xf32> -> vector<8x256xf32>
    %42 = arith.addf %36, %41 : vector<8x256xf32>
    %c2 = arith.constant 2 : index
    %c0_12 = arith.constant 0 : index
    %c0_13 = arith.constant 0 : index
    %43 = vector.load %arg3[%c2, %c0_12, %c0_13] : memref<3x8x24xbf16, #tpu.memory_space<vmem>>, vector<1x8x24xbf16>
    %44 = vector.shape_cast %43 : vector<1x8x24xbf16> to vector<8x24xbf16>
    %c240_i32 = arith.constant 240 : i32
    %45 = tpu.dynamic_rotate %15 by %c240_i32 dim 1 : vector<8x256xf32>, i32 -> vector<8x256xf32>
    %46 = vector.broadcast %7 : vector<1x256xf32> to vector<8x256xf32>
    %47 = arith.mulf %45, %46 : vector<8x256xf32>
    %c240_i32_14 = arith.constant 240 : i32
    %48 = tpu.dynamic_rotate %1 by %c240_i32_14 dim 1 : vector<8x256xf32>, i32 -> vector<8x256xf32>
    %49 = vector.broadcast %7 : vector<1x256xf32> to vector<8x256xf32>
    %50 = arith.mulf %48, %49 : vector<8x256xf32>
    %c240_i32_15 = arith.constant 240 : i32
    %51 = tpu.dynamic_rotate %22 by %c240_i32_15 dim 1 : vector<8x256xf32>, i32 -> vector<8x256xf32>
    %52 = vector.broadcast %7 : vector<1x256xf32> to vector<8x256xf32>
    %53 = arith.mulf %51, %52 : vector<8x256xf32>
    %54 = tpu.concatenate %47, %50, %53 in 0 : vector<8x256xf32>, vector<8x256xf32>, vector<8x256xf32> -> vector<24x256xf32>
    %55 = arith.truncf %54 : vector<24x256xf32> to vector<24x256xbf16>
    %cst_16 = arith.constant dense<0.000000e+00> : vector<8x256xf32>
    %56 = tpu.matmul %44, %55, %cst_16 {dimension_numbers = #tpu.dot_dimension_numbers<[1], [0], [0], [1], [0, 0, 1, 1], [], []>} : vector<8x24xbf16>, vector<24x256xbf16>, vector<8x256xf32> -> vector<8x256xf32>
    %57 = arith.addf %42, %56 : vector<8x256xf32>
    %c0_17 = arith.constant 0 : index
    %c0_18 = arith.constant 0 : index
    %58 = vector.load %arg4[%c0_17, %c0_18] : memref<8x1xf32, #tpu.memory_space<vmem>>, vector<8x1xf32>
    %59 = vector.broadcast %58 : vector<8x1xf32> to vector<8x256xf32>
    %60 = arith.addf %57, %59 : vector<8x256xf32>
    %cst_19 = arith.constant 0.000000e+00 : f32
    %61 = vector.broadcast %cst_19 : f32 to vector<8x256xf32>
    %62 = arith.maximumf %60, %61 : vector<8x256xf32>
    %c1_i32_20 = arith.constant 1 : i32
    %63 = tpu.dynamic_rotate %62 by %c1_i32_20 dim 1 : vector<8x256xf32>, i32 -> vector<8x256xf32>
    %64 = vector.broadcast %6 : vector<1x256xf32> to vector<8x256xf32>
    %65 = arith.mulf %63, %64 : vector<8x256xf32>
    %c241_i32_21 = arith.constant 241 : i32
    %66 = tpu.dynamic_rotate %62 by %c241_i32_21 dim 1 : vector<8x256xf32>, i32 -> vector<8x256xf32>
    %67 = vector.broadcast %4 : vector<1x256xf32> to vector<8x256xf32>
    %68 = arith.mulf %66, %67 : vector<8x256xf32>
    %69 = arith.addf %65, %68 : vector<8x256xf32>
    %c255_i32_22 = arith.constant 255 : i32
    %70 = tpu.dynamic_rotate %62 by %c255_i32_22 dim 1 : vector<8x256xf32>, i32 -> vector<8x256xf32>
    %71 = vector.broadcast %5 : vector<1x256xf32> to vector<8x256xf32>
    %72 = arith.mulf %70, %71 : vector<8x256xf32>
    %c15_i32_23 = arith.constant 15 : i32
    %73 = tpu.dynamic_rotate %62 by %c15_i32_23 dim 1 : vector<8x256xf32>, i32 -> vector<8x256xf32>
    %74 = vector.broadcast %3 : vector<1x256xf32> to vector<8x256xf32>
    %75 = arith.mulf %73, %74 : vector<8x256xf32>
    %76 = arith.addf %72, %75 : vector<8x256xf32>
    %c0_24 = arith.constant 0 : index
    %c0_25 = arith.constant 0 : index
    %c0_26 = arith.constant 0 : index
    %77 = vector.load %arg5[%c0_24, %c0_25, %c0_26] : memref<3x8x24xbf16, #tpu.memory_space<vmem>>, vector<1x8x24xbf16>
    %78 = vector.shape_cast %77 : vector<1x8x24xbf16> to vector<8x24xbf16>
    %c16_i32_27 = arith.constant 16 : i32
    %79 = tpu.dynamic_rotate %69 by %c16_i32_27 dim 1 : vector<8x256xf32>, i32 -> vector<8x256xf32>
    %80 = vector.broadcast %8 : vector<1x256xf32> to vector<8x256xf32>
    %81 = arith.mulf %79, %80 : vector<8x256xf32>
    %c16_i32_28 = arith.constant 16 : i32
    %82 = tpu.dynamic_rotate %62 by %c16_i32_28 dim 1 : vector<8x256xf32>, i32 -> vector<8x256xf32>
    %83 = vector.broadcast %8 : vector<1x256xf32> to vector<8x256xf32>
    %84 = arith.mulf %82, %83 : vector<8x256xf32>
    %c16_i32_29 = arith.constant 16 : i32
    %85 = tpu.dynamic_rotate %76 by %c16_i32_29 dim 1 : vector<8x256xf32>, i32 -> vector<8x256xf32>
    %86 = vector.broadcast %8 : vector<1x256xf32> to vector<8x256xf32>
    %87 = arith.mulf %85, %86 : vector<8x256xf32>
    %88 = tpu.concatenate %81, %84, %87 in 0 : vector<8x256xf32>, vector<8x256xf32>, vector<8x256xf32> -> vector<24x256xf32>
    %89 = arith.truncf %88 : vector<24x256xf32> to vector<24x256xbf16>
    %cst_30 = arith.constant dense<0.000000e+00> : vector<8x256xf32>
    %90 = tpu.matmul %78, %89, %cst_30 {dimension_numbers = #tpu.dot_dimension_numbers<[1], [0], [0], [1], [0, 0, 1, 1], [], []>} : vector<8x24xbf16>, vector<24x256xbf16>, vector<8x256xf32> -> vector<8x256xf32>
    %c1_31 = arith.constant 1 : index
    %c0_32 = arith.constant 0 : index
    %c0_33 = arith.constant 0 : index
    %91 = vector.load %arg5[%c1_31, %c0_32, %c0_33] : memref<3x8x24xbf16, #tpu.memory_space<vmem>>, vector<1x8x24xbf16>
    %92 = vector.shape_cast %91 : vector<1x8x24xbf16> to vector<8x24xbf16>
    %93 = tpu.concatenate %69, %62, %76 in 0 : vector<8x256xf32>, vector<8x256xf32>, vector<8x256xf32> -> vector<24x256xf32>
    %94 = arith.truncf %93 : vector<24x256xf32> to vector<24x256xbf16>
    %cst_34 = arith.constant dense<0.000000e+00> : vector<8x256xf32>
    %95 = tpu.matmul %92, %94, %cst_34 {dimension_numbers = #tpu.dot_dimension_numbers<[1], [0], [0], [1], [0, 0, 1, 1], [], []>} : vector<8x24xbf16>, vector<24x256xbf16>, vector<8x256xf32> -> vector<8x256xf32>
    %96 = arith.addf %90, %95 : vector<8x256xf32>
    %c2_35 = arith.constant 2 : index
    %c0_36 = arith.constant 0 : index
    %c0_37 = arith.constant 0 : index
    %97 = vector.load %arg5[%c2_35, %c0_36, %c0_37] : memref<3x8x24xbf16, #tpu.memory_space<vmem>>, vector<1x8x24xbf16>
    %98 = vector.shape_cast %97 : vector<1x8x24xbf16> to vector<8x24xbf16>
    %c240_i32_38 = arith.constant 240 : i32
    %99 = tpu.dynamic_rotate %69 by %c240_i32_38 dim 1 : vector<8x256xf32>, i32 -> vector<8x256xf32>
    %100 = vector.broadcast %7 : vector<1x256xf32> to vector<8x256xf32>
    %101 = arith.mulf %99, %100 : vector<8x256xf32>
    %c240_i32_39 = arith.constant 240 : i32
    %102 = tpu.dynamic_rotate %62 by %c240_i32_39 dim 1 : vector<8x256xf32>, i32 -> vector<8x256xf32>
    %103 = vector.broadcast %7 : vector<1x256xf32> to vector<8x256xf32>
    %104 = arith.mulf %102, %103 : vector<8x256xf32>
    %c240_i32_40 = arith.constant 240 : i32
    %105 = tpu.dynamic_rotate %76 by %c240_i32_40 dim 1 : vector<8x256xf32>, i32 -> vector<8x256xf32>
    %106 = vector.broadcast %7 : vector<1x256xf32> to vector<8x256xf32>
    %107 = arith.mulf %105, %106 : vector<8x256xf32>
    %108 = tpu.concatenate %101, %104, %107 in 0 : vector<8x256xf32>, vector<8x256xf32>, vector<8x256xf32> -> vector<24x256xf32>
    %109 = arith.truncf %108 : vector<24x256xf32> to vector<24x256xbf16>
    %cst_41 = arith.constant dense<0.000000e+00> : vector<8x256xf32>
    %110 = tpu.matmul %98, %109, %cst_41 {dimension_numbers = #tpu.dot_dimension_numbers<[1], [0], [0], [1], [0, 0, 1, 1], [], []>} : vector<8x24xbf16>, vector<24x256xbf16>, vector<8x256xf32> -> vector<8x256xf32>
    %111 = arith.addf %96, %110 : vector<8x256xf32>
    %c0_42 = arith.constant 0 : index
    %c0_43 = arith.constant 0 : index
    %112 = vector.load %arg6[%c0_42, %c0_43] : memref<8x1xf32, #tpu.memory_space<vmem>>, vector<8x1xf32>
    %113 = vector.broadcast %112 : vector<8x1xf32> to vector<8x256xf32>
    %114 = arith.addf %111, %113 : vector<8x256xf32>
    %115 = arith.addf %114, %1 : vector<8x256xf32>
    %cst_44 = arith.constant 0.000000e+00 : f32
    %116 = vector.broadcast %cst_44 : f32 to vector<8x256xf32>
    %117 = arith.maximumf %115, %116 : vector<8x256xf32>
    %c0_45 = arith.constant 0 : index
    %c0_46 = arith.constant 0 : index
    %c0_47 = arith.constant 0 : index
    %118 = vector.load %arg7[%c0_45, %c0_46, %c0_47] : memref<1x8x256xf32, #tpu.memory_space<vmem>>, vector<1x8x256xf32>
    %119 = vector.shape_cast %118 : vector<1x8x256xf32> to vector<8x256xf32>
    %120 = vector.shape_cast %117 : vector<8x256xf32> to vector<1x8x256xf32>
    tpu.vector_store %arg7[%c0_45, %c0_46, %c0_47], %120 {strides = array<i32>} : memref<1x8x256xf32, #tpu.memory_space<vmem>>, vector<1x8x256xf32>,
    return
  }
  func.func @transform_0(%arg0: i32) -> (i32, i32, i32) {
    %c0_i32 = arith.constant 0 : i32
    %c0_i32_0 = arith.constant 0 : i32
    %c0_i32_1 = arith.constant 0 : i32
    return %arg0, %c0_i32, %c0_i32_0 : i32, i32, i32
  }
  func.func @transform_1(%arg0: i32) -> (i32, i32) {
    %c0_i32 = arith.constant 0 : i32
    %c0_i32_0 = arith.constant 0 : i32
    %c0_i32_1 = arith.constant 0 : i32
    return %c0_i32, %c0_i32_0 : i32, i32
  }
  func.func @transform_2(%arg0: i32) -> (i32, i32, i32) {
    %c0_i32 = arith.constant 0 : i32
    %c0_i32_0 = arith.constant 0 : i32
    %c0_i32_1 = arith.constant 0 : i32
    %c0_i32_2 = arith.constant 0 : i32
    return %c0_i32, %c0_i32_0, %c0_i32_1 : i32, i32, i32
  }
  func.func @transform_3(%arg0: i32) -> (i32, i32) {
    %c0_i32 = arith.constant 0 : i32
    %c0_i32_0 = arith.constant 0 : i32
    %c0_i32_1 = arith.constant 0 : i32
    return %c0_i32, %c0_i32_0 : i32, i32
  }
  func.func @transform_4(%arg0: i32) -> (i32, i32, i32) {
    %c0_i32 = arith.constant 0 : i32
    %c0_i32_0 = arith.constant 0 : i32
    %c0_i32_1 = arith.constant 0 : i32
    %c0_i32_2 = arith.constant 0 : i32
    return %c0_i32, %c0_i32_0, %c0_i32_1 : i32, i32, i32
  }
  func.func @transform_5(%arg0: i32) -> (i32, i32) {
    %c0_i32 = arith.constant 0 : i32
    %c0_i32_0 = arith.constant 0 : i32
    %c0_i32_1 = arith.constant 0 : i32
    return %c0_i32, %c0_i32_0 : i32, i32
  }
  func.func @transform_6(%arg0: i32) -> (i32, i32, i32) {
    %c0_i32 = arith.constant 0 : i32
    %c0_i32_0 = arith.constant 0 : i32
    %c0_i32_1 = arith.constant 0 : i32
    return %arg0, %c0_i32, %c0_i32_0 : i32, i32, i32
  }
}

</mosaic_0001>

<bundles_post_ra>
// kernel: block_periodic_shift_conv2d1.1
= control target key start
LH: loop header
LB: loop body
LE: loop exit
PB: predicated region body
PF: predicated region fallthrough
CT: control target
= control target key end

     0   :  { %s995_s21 = smov 0   ;;  %s1310_s0 = inlined_call_operand.vmem [shape: f32[2,8,256], index: 0, kind: input, shape index: {}]   ;;  %s1311_s1 = inlined_call_operand.vmem [shape: f32[8,256], index: 1, kind: input, shape index: {}]   ;;  %s1312_s2 = inlined_call_operand.vmem [shape: bf16[3,8,24], index: 2, kind: input, shape index: {}]   ;;  %s1313_s3 = inlined_call_operand.vmem [shape: f32[8,1], index: 3, kind: input, shape index: {}]   ;;  %s1314_s4 = inlined_call_operand.vmem [shape: bf16[3,8,24], index: 4, kind: input, shape index: {}]   ;;  %s1315_s5 = inlined_call_operand.vmem [shape: f32[8,1], index: 5, kind: input, shape index: {}]   ;;  %s1316_s6 = inlined_call_operand.vmem [shape: f32[2,8,256], index: 6, kind: output, shape index: {}]  }
   0x1 LB: > { %s900_s22 = sadd.s32 4294967295, %s951_s21   ;;  %p904_p0 = scmp.ge.s32.totalorder %s951_s21, 1  ;;  %s951_s21 = sphi %s995_s21, %s16_s21  }
   0x2   : > { %p212_p1 = scmp.lt.s32.totalorder %s951_s21, 3 }
   0x4   : > { %p213_p2 = pnand %p904_p0, %p212_p1 }
   0x5   : > { %p242_p3 = scmp.lt.s32.totalorder (!%p213_p2), %s900_s22, 1  ;;  %s953_s27 = smov (!%p213_p2), 113   ;;  %v261_v2 = vlaneseq (!%p213_p2)  ;;  %v255_v6 = vld [vmem:[%s1311_s1] sm:$0xff] (!%p213_p2)  ;;  %v1061_v12 = vld [vmem:[%s1311_s1 + $0x8] sm:$0xff] (!%p213_p2)  ;;  %v959_v35 = vmov (!%p213_p2), 0   ;;  %vm379_vm4 = vcmask (!%p213_p2), 1043456  }
   0x6   : > { %216 = sbr.rel (%p213_p2) target bundleno = 981 (0x3d5), region = 44  ;;  %s954_s28 = smov (!%p213_p2), 1   ;;  %418 = vmatprep.mubr.bf16.mxu0 (!%p213_p2), %v959_v35  ;;  %468 = vmatprep.mubr.bf16.mxu1 (!%p213_p2), %v959_v35  ;;  %v909_v57 = vld [vmem:[%s1312_s2 + $0x4] sm:$0xf] (!%p213_p2)  ;;  %vm375_vm5 = vcmask (!%p213_p2), 195584  }
   0x7   : > { %v1023_v3 = vshrl.u32 (!%p213_p2), %v261_v2, 7  ;;  %s955_s29 = smov (!%p213_p2), 127   ;;  %s956_s8 = smov (!%p213_p2), 15   ;;  %v1054_v9 = vand.u32 (!%p213_p2), 127, %v261_v2  ;;  %944 = vset.pattern.permute.xlu0 (!%p213_p2), %v959_v35  ;;  %v568_v58 = vld [vmem:[%s1313_s3] sm:$0xff] (!%p213_p2) }
   0x8   : > { %s957_s9 = smov (!%p213_p2), 16   ;;  %s958_s10 = smov (!%p213_p2), 112  }
   0x9   : > { %v341_v4 = vsub.s32 (!%p213_p2), 5, %v1023_v3  ;;  %v488_v5 = vsub.s32 (!%p213_p2), 4, %v1023_v3  ;;  %v285_v10 = vsub.s32 (!%p213_p2), 1, %v1023_v3  ;;  %v268_v11 = vsub.s32 (!%p213_p2), 3, %v1023_v3 }
   0xa   : > { %vm280_vm0 = vcmp.lt.s32.totalorder (!%p213_p2), %v1054_v9, 113  ;;  %vm263_vm1 = vcmp.lt.s32.totalorder (!%p213_p2), %v1054_v9, 1  ;;  %v304_v21 = vsub.s32 (!%p213_p2), 2, %v1023_v3  ;;  %v321_v22 = vsub.s32 (!%p213_p2), 0, %v1023_v3 }
   0xb   : > { %v1036_v7 = vrot.slane (!%p213_p2), %v255_v6, %v341_v4  ;;  %v1040_v8 = vrot.slane (!%p213_p2), %v255_v6, %v488_v5  ;;  %v1065_v15 = vrot.slane (!%p213_p2), %v255_v6, %v285_v10  ;;  %v1068_v16 = vrot.slane (!%p213_p2), %v1061_v12, %v285_v10 }
   0xc   : > { %v1070_v17 = vrot.slane (!%p213_p2), %v255_v6, %v268_v11  ;;  %v1073_v18 = vrot.slane (!%p213_p2), %v1061_v12, %v268_v11  ;;  %vm299_vm2 = vcmp.lt.s32.totalorder (!%p213_p2), %v1054_v9, 127  ;;  %v1092_v36 = vrot.slane (!%p213_p2), %v255_v6, %v304_v21 }
   0xd   : > { %s1318_s22 = smov (!%p242_p3, %s900_s22), 1  ;;  %v1095_v37 = vrot.slane %v1061_v12, %v304_v21  ;;  %v1097_v38 = vrot.slane %v255_v6, %v321_v22  ;;  %vm316_vm3 = vcmp.lt.s32.totalorder %v1054_v9, 15  ;;  %v1107_v41 = vrot.slane %v1061_v12, %v321_v22 }
   0xe   : > { %s927_s23 = sshll.u32 %s1318_s22, 4  ;;  %vm336_vm6 = vcmp.lt.s32.totalorder %v1054_v9, 16  ;;  %v1140_v63 = vrot.slane %v1061_v12, %v341_v4  ;;  %vm483_vm7 = vcmp.lt.s32.totalorder %v1054_v9, 112 }
   0xf   : > { %s246_s26 = scalar_lea.vmem %s1310_s0, %s927_s23 }
  0x10   : > { %v1011_v0 = vld [vmem:[%s246_s26] sm:$0xff]  ;;  %v1017_v1 = vld [vmem:[%s246_s26 + $0x8] sm:$0xff] }
  0x11   : > { %276 = vrot.lane.b32.xlu1 %v1011_v0, %s953_s27  ;;  %257 = vrot.lane.b32.xlu0 %v1011_v0, %s954_s28 }
  0x15   : > { %278 = vrot.lane.b32.xlu1 %v1017_v1, %s953_s27  ;;  %259 = vrot.lane.b32.xlu0 %v1017_v1, %s954_s28 }
  0x19   : > { %297 = vrot.lane.b32.xlu1 %v1017_v1, %s955_s29  ;;  %295 = vrot.lane.b32.xlu0 %v1011_v0, %s955_s29 }
  0x1d   : > { %314 = vrot.lane.b32.xlu1 %v1017_v1, %s956_s8  ;;  %312 = vrot.lane.b32.xlu0 %v1011_v0, %s956_s8 }
  0x21   : > { %351 = vrot.lane.b32.xlu1 %v1017_v1, %s957_s9  ;;  %349 = vrot.lane.b32.xlu0 %v1011_v0, %s957_s9 }
  0x25   : > { %498 = vrot.lane.b32.xlu1 %v1017_v1, %s958_s10  ;;  %496 = vrot.lane.b32.xlu0 %v1011_v0, %s958_s10 }
  0x83   : > { %v277_v13 = vpop.permute.xlu1 %276  ;;  %v258_v14 = vpop.permute.xlu0 %257 }
  0x87   : > { %v279_v19 = vpop.permute.xlu1 %278  ;;  %v260_v20 = vpop.permute.xlu0 %259 }
  0x88   : > { %v281_v23 = vsel %vm280_vm0, %v277_v13, %v279_v19  ;;  %v282_v24 = vsel %vm280_vm0, %v279_v19, %v277_v13  ;;  %v264_v25 = vsel %vm263_vm1, %v258_v14, %v260_v20  ;;  %v265_v26 = vsel %vm263_vm1, %v260_v20, %v258_v14 }
  0x89   : > { %v291_v27 = vmul.f32 %v1065_v15, %v281_v23  ;;  %v292_v28 = vmul.f32 %v1068_v16, %v282_v24  ;;  %v274_v29 = vmul.f32 %v1070_v17, %v265_v26  ;;  %v275_v30 = vmul.f32 %v1073_v18, %v264_v25 }
  0x8a   : > { %v1150_v13 = vrot.slane %v1061_v12, %v488_v5 }
  0x8b   : > { %v298_v31 = vpop.permute.xlu1 %297  ;;  %v296_v32 = vpop.permute.xlu0 %295  ;;  %v293_v33 = vadd.f32 %v291_v27, %v274_v29  ;;  %v294_v34 = vadd.f32 %v292_v28, %v275_v30 }
  0x8c   : > { %v300_v39 = vsel %vm299_vm2, %v296_v32, %v298_v31  ;;  %v301_v42 = vsel %vm299_vm2, %v298_v31, %v296_v32 }
  0x8d   : > { %332 = vrot.lane.b32.xlu0 %v293_v33, %s957_s9  ;;  %334 = vrot.lane.b32.xlu1 %v294_v34, %s957_s9  ;;  %v372_v40 = vpack.c.bf16 %v1017_v1, %v294_v34  ;;  %v371_v43 = vpack.c.bf16 %v1011_v0, %v293_v33  ;;  %v310_v46 = vmul.f32 %v1092_v36, %v300_v39 }
  0x8e   : > { %v311_v49 = vmul.f32 %v1095_v37, %v301_v42 }
  0x8f   : > { %v315_v44 = vpop.permute.xlu1 %314  ;;  %386 = vmatprep.subr.bf16.mxu0 %v372_v40  ;;  %v313_v45 = vpop.permute.xlu0 %312 }
  0x90   : > { %v317_v47 = vsel %vm316_vm3, %v313_v45, %v315_v44  ;;  %v318_v48 = vsel %vm316_vm3, %v315_v44, %v313_v45  ;;  %387 = vmatpush1.bf16.msra.mxu0 %v371_v43 }
  0x91   : > { %v327_v50 = vmul.f32 %v1097_v38, %v318_v48  ;;  %v328_v51 = vmul.f32 %v1107_v41, %v317_v47  ;;  %479 = vrot.lane.b32.xlu0 %v293_v33, %s958_s10  ;;  %481 = vrot.lane.b32.xlu1 %v294_v34, %s958_s10 }
  0x93   : > { %v329_v52 = vadd.f32 %v327_v50, %v310_v46  ;;  %v330_v53 = vadd.f32 %v328_v51, %v311_v49  ;;  %v352_v59 = vpop.permute.xlu1 %351  ;;  %v350_v60 = vpop.permute.xlu0 %349 }
  0x94   : > { %v353_v2 = vsel %vm336_vm6, %v350_v60, %v352_v59  ;;  %v354_v6 = vsel %vm336_vm6, %v352_v59, %v350_v60 }
  0x95   : > { %357 = vrot.lane.b32.xlu0 %v329_v52, %s957_s9  ;;  %359 = vrot.lane.b32.xlu1 %v330_v53, %s957_s9  ;;  %v374_v54 = vpack.c.bf16 %v330_v53, %v330_v53  ;;  %v373_v55 = vpack.c.bf16 %v329_v52, %v329_v52  ;;  %v355_v19 = vmul.f32 %v354_v6, %v1036_v7 }
  0x96   : > { %v356_v22 = vmul.f32 %v353_v2, %v1140_v63 }
  0x97   : > { %910 = vmatprep.subr.msk.bf16.mxu0 %vm379_vm4, %v374_v54  ;;  %v381_v56 = vsel %vm379_vm4, %v373_v55, 0  ;;  %v499_v61 = vpop.permute.xlu1 %498  ;;  %v497_v62 = vpop.permute.xlu0 %496  ;;  %v331_v54 = vld [vmem:[%s1312_s2] sm:$0xf] }
  0x98   : > { %389 = vmatpush1.bf16.msra.mxu0 %v381_v56  ;;  %v500_v3 = vsel %vm483_vm7, %v497_v62, %v499_v61  ;;  %v501_v5 = vsel %vm483_vm7, %v499_v61, %v497_v62 }
  0x99   : > { %504 = vrot.lane.b32.xlu0 %v329_v52, %s958_s10  ;;  %506 = vrot.lane.b32.xlu1 %v330_v53, %s958_s10  ;;  %v502_v28 = vmul.f32 %v500_v3, %v1040_v8  ;;  %v503_v29 = vmul.f32 %v501_v5, %v1150_v13 }
  0x9b   : > { %911 = vmatmul.mubr.msk.bf16.vlgmr.msra.gmra.mrb[0].mxu0 %vm375_vm5, %v909_v57 }
  0x9c   : > { %557 = vmatprep.mubr.bf16.mxu0 %v959_v35 }
  0x9d   : > { %571 = vperm.xlu0 %944, %v568_v58   ;;  %v914_v58 = vld [vmem:[%s1312_s2 + $0x8] sm:$0xf] }
  0xff   : > { %v335_v10 = vpop.permute.xlu1 %334  ;;  %v333_v11 = vpop.permute.xlu0 %332 }
 0x100   : > { %v337_v14 = vsel %vm336_vm6, %v333_v11, %v335_v10  ;;  %v338_v4 = vsel %vm336_vm6, %v335_v10, %v333_v11 }
 0x101   : > { %v347_v20 = vmul.f32 %v1036_v7, %v338_v4  ;;  %v348_v21 = vmul.f32 %v1140_v63, %v337_v14 }
 0x103   : > { %v482_v12 = vpop.permute.xlu1 %481  ;;  %v480_v23 = vpop.permute.xlu0 %479  ;;  %v366_v24 = vpack.c.bf16 %v356_v22, %v348_v21  ;;  %v365_v25 = vpack.c.bf16 %v355_v19, %v347_v20 }
 0x104   : > { %v484_v26 = vsel %vm483_vm7, %v480_v23, %v482_v12  ;;  %v485_v27 = vsel %vm483_vm7, %v482_v12, %v480_v23 }
 0x105   : > { %v494_v30 = vmul.f32 %v1040_v8, %v484_v26  ;;  %v495_v31 = vmul.f32 %v1150_v13, %v485_v27  ;;  %436 = vmatprep.subr.bf16.mxu1 %v366_v24 }
 0x106   : > { %437 = vmatpush1.bf16.msra.mxu1 %v365_v25 }
 0x107   : > { %v512_v32 = vpack.c.bf16 %v502_v28, %v494_v30  ;;  %v360_v33 = vpop.permute.xlu1 %359  ;;  %v358_v34 = vpop.permute.xlu0 %357  ;;  %v513_v39 = vpack.c.bf16 %v503_v29, %v495_v31 }
 0x108   : > { %v361_v40 = vsel %vm336_vm6, %v358_v34, %v360_v33  ;;  %v362_v42 = vsel %vm336_vm6, %v360_v33, %v358_v34 }
 0x109   : > { %v363_v43 = vmul.f32 %v362_v42, %v1036_v7  ;;  %v364_v44 = vmul.f32 %v361_v40, %v1140_v63  ;;  %525 = vmatprep.subr.bf16.mxu0 %v513_v39 }
 0x10a   : > { %526 = vmatpush1.bf16.msra.mxu0 %v512_v32 }
 0x10b   : > { %v367_v45 = vpack.c.bf16 %v363_v43, %v363_v43  ;;  %v368_v46 = vpack.c.bf16 %v364_v44, %v364_v44  ;;  %v507_v47 = vpop.permute.xlu1 %506  ;;  %v505_v48 = vpop.permute.xlu0 %504 }
 0x10c   : > { %v508_v49 = vsel %vm483_vm7, %v505_v48, %v507_v47  ;;  %v509_v50 = vsel %vm483_vm7, %v507_v47, %v505_v48 }
 0x10d   : > { %v510_v51 = vmul.f32 %v508_v49, %v1040_v8  ;;  %v511_v52 = vmul.f32 %v509_v50, %v1150_v13  ;;  %912 = vmatprep.subr.msk.bf16.mxu1 %vm379_vm4, %v368_v46  ;;  %v431_v53 = vsel %vm379_vm4, %v367_v45, 0 }
 0x10e   : > { %439 = vmatpush1.bf16.msra.mxu1 %v431_v53 }
 0x10f   : > { %v514_v55 = vpack.c.bf16 %v510_v51, %v510_v51  ;;  %v515_v56 = vpack.c.bf16 %v511_v52, %v511_v52 }
 0x111   : > { %913 = vmatmul.mubr.msk.bf16.vlgmr.msra.gmra.mrb[0].mxu1 %vm375_vm5, %v331_v54  ;;  %915 = vmatprep.subr.msk.bf16.mxu0 %vm379_vm4, %v515_v56  ;;  %v520_v57 = vsel %vm379_vm4, %v514_v55, 0 }
 0x112   : > { %528 = vmatpush1.bf16.msra.mxu0 %v520_v57  ;;  %690 = vmatprep.mubr.bf16.mxu1 %v959_v35 }
 0x115   : > { %916 = vmatmul.mubr.msk.bf16.vlgmr.msra.gmra.mrb[4].mxu0 %vm375_vm5, %v914_v58 }
 0x116   : > { %740 = vmatprep.mubr.bf16.mxu0 %v959_v35 }
 0x11c   : > { %v572_v20 = vpop.permute.xlu0 %571 }
 0x16e   : > { %v420_v59 = vpop.f32.mrb[0].mxu0 }
 0x16f   : > { %v422_v60 = vpop.f32.mrb[1].mxu0 }
 0x170   : > { %v424_v61 = vpop.f32.mrb[2].mxu0 }
 0x171   : > { %v425_v62 = vpop.f32.mrb[3].mxu0 }
 0x1e4   : > { %v470_v2 = vpop.f32.mrb[0].mxu1 }
 0x1e5   : > { %v471_v6 = vadd.f32 %v470_v2, %v420_v59  ;;  %v472_v10 = vpop.f32.mrb[1].mxu1 }
 0x1e6   : > { %v473_v11 = vadd.f32 %v472_v10, %v422_v60  ;;  %v474_v14 = vpop.f32.mrb[2].mxu1 }
 0x1e7   : > { %v475_v4 = vpop.f32.mrb[3].mxu1 }
 0x1e8   : > { %v559_v19 = vpop.f32.mrb[4].mxu0 }
 0x1e9   : > { %v566_v21 = vadd.f32 %v559_v19, %v471_v6  ;;  %v561_v22 = vpop.f32.mrb[5].mxu0 }
 0x1ea   : > { %v567_v3 = vadd.f32 %v561_v22, %v473_v11  ;;  %v563_v5 = vpop.f32.mrb[6].mxu0 }
 0x1eb   : > { %v574_v12 = vadd.f32 %v572_v20, %v566_v21  ;;  %v564_v23 = vpop.f32.mrb[7].mxu0 }
 0x1ec   : > { %v575_v24 = vadd.f32 %v572_v20, %v567_v3 }
 0x1ed   : > { %v576_v25 = vmax.f32 %v574_v12, 0.0 }
 0x1ee   : > { %v577_v26 = vmax.f32 %v575_v24, 0.0 }
 0x1ef   : > { %586 = vrot.lane.b32.xlu0 %v576_v25, %s953_s27  ;;  %578 = vrot.lane.b32.xlu1 %v576_v25, %s954_s28 }
 0x1f3   : > { %596 = vrot.lane.b32.xlu0 %v576_v25, %s955_s29  ;;  %580 = vrot.lane.b32.xlu1 %v577_v26, %s954_s28 }
 0x1f7   : > { %604 = vrot.lane.b32.xlu0 %v576_v25, %s956_s8  ;;  %588 = vrot.lane.b32.xlu1 %v577_v26, %s953_s27 }
 0x1fb   : > { %623 = vrot.lane.b32.xlu0 %v576_v25, %s957_s9  ;;  %598 = vrot.lane.b32.xlu1 %v577_v26, %s955_s29 }
 0x1ff   : > { %759 = vrot.lane.b32.xlu0 %v576_v25, %s958_s10  ;;  %606 = vrot.lane.b32.xlu1 %v577_v26, %s956_s8 }
 0x203   : > { %625 = vrot.lane.b32.xlu1 %v577_v26, %s957_s9 }
 0x207   : > { %761 = vrot.lane.b32.xlu1 %v577_v26, %s958_s10 }
 0x261   : > { %v579_v27 = vpop.permute.xlu1 %578  ;;  %v587_v28 = vpop.permute.xlu0 %586 }
 0x265   : > { %v581_v29 = vpop.permute.xlu1 %580  ;;  %v597_v39 = vpop.permute.xlu0 %596 }
 0x266   : > { %v582_v30 = vsel %vm263_vm1, %v579_v27, %v581_v29  ;;  %v583_v31 = vsel %vm263_vm1, %v581_v29, %v579_v27 }
 0x267   : > { %v584_v40 = vmul.f32 %v583_v31, %v1070_v17  ;;  %v585_v42 = vmul.f32 %v582_v30, %v1073_v18 }
 0x269   : > { %v589_v32 = vpop.permute.xlu1 %588  ;;  %v605_v18 = vpop.permute.xlu0 %604 }
 0x26a   : > { %v590_v33 = vsel %vm280_vm0, %v587_v28, %v589_v32  ;;  %v591_v34 = vsel %vm280_vm0, %v589_v32, %v587_v28 }
 0x26b   : > { %v592_v43 = vmul.f32 %v590_v33, %v1065_v15  ;;  %v593_v44 = vmul.f32 %v591_v34, %v1068_v16 }
 0x26d   : > { %v599_v45 = vpop.permute.xlu1 %598  ;;  %v595_v46 = vadd.f32 %v593_v44, %v585_v42  ;;  %v594_v47 = vadd.f32 %v592_v43, %v584_v40  ;;  %v624_v59 = vpop.permute.xlu0 %623 }
 0x26e   : > { %v600_v48 = vsel %vm299_vm2, %v597_v39, %v599_v45  ;;  %v601_v17 = vsel %vm299_vm2, %v599_v45, %v597_v39 }
 0x26f   : > { %617 = vrot.lane.b32.xlu1 %v595_v46, %s957_s9  ;;  %615 = vrot.lane.b32.xlu0 %v594_v47, %s957_s9  ;;  %v646_v49 = vpack.c.bf16 %v577_v26, %v595_v46  ;;  %v645_v50 = vpack.c.bf16 %v576_v25, %v594_v47  ;;  %v602_v16 = vmul.f32 %v600_v48, %v1092_v36 }
 0x270   : > { %v603_v53 = vmul.f32 %v601_v17, %v1095_v37 }
 0x271   : > { %658 = vmatprep.subr.bf16.mxu1 %v646_v49  ;;  %v607_v15 = vpop.permute.xlu1 %606  ;;  %v760_v61 = vpop.permute.xlu0 %759 }
 0x272   : > { %v608_v51 = vsel %vm316_vm3, %v605_v18, %v607_v15  ;;  %v609_v52 = vsel %vm316_vm3, %v607_v15, %v605_v18  ;;  %659 = vmatpush1.bf16.msra.mxu1 %v645_v50  ;;  %v614_v50 = vld [vmem:[%s1314_s4] sm:$0xf] }
 0x273   : > { %v610_v54 = vmul.f32 %v609_v52, %v1097_v38  ;;  %v611_v55 = vmul.f32 %v608_v51, %v1107_v41  ;;  %753 = vrot.lane.b32.xlu1 %v595_v46, %s958_s10  ;;  %751 = vrot.lane.b32.xlu0 %v594_v47, %s958_s10  ;;  %v917_v38 = vld [vmem:[%s1314_s4 + $0x4] sm:$0xf] }
 0x274   : > { %v831_v41 = vld [vmem:[%s1315_s5] sm:$0xff] }
 0x275   : > { %v612_v56 = vadd.f32 %v610_v54, %v602_v16  ;;  %v613_v57 = vadd.f32 %v611_v55, %v603_v53  ;;  %v626_v60 = vpop.permute.xlu1 %625 }
 0x276   : > { %v627_v2 = vsel %vm336_vm6, %v624_v59, %v626_v60  ;;  %v628_v6 = vsel %vm336_vm6, %v626_v60, %v624_v59 }
 0x277   : > { %631 = vrot.lane.b32.xlu0 %v612_v56, %s957_s9  ;;  %633 = vrot.lane.b32.xlu1 %v613_v57, %s957_s9  ;;  %v648_v36 = vpack.c.bf16 %v613_v57, %v613_v57  ;;  %v647_v58 = vpack.c.bf16 %v612_v56, %v612_v56  ;;  %v630_v19 = vmul.f32 %v627_v2, %v1140_v63 }
 0x279   : > { %918 = vmatprep.subr.msk.bf16.mxu1 %vm379_vm4, %v648_v36  ;;  %v653_v37 = vsel %vm379_vm4, %v647_v58, 0  ;;  %v762_v62 = vpop.permute.xlu1 %761 }
 0x27a   : > { %661 = vmatpush1.bf16.msra.mxu1 %v653_v37  ;;  %v763_v22 = vsel %vm483_vm7, %v760_v61, %v762_v62  ;;  %v764_v3 = vsel %vm483_vm7, %v762_v62, %v760_v61 }
 0x27b   : > { %767 = vrot.lane.b32.xlu0 %v612_v56, %s958_s10  ;;  %769 = vrot.lane.b32.xlu1 %v613_v57, %s958_s10  ;;  %v765_v27 = vmul.f32 %v763_v22, %v1040_v8  ;;  %v766_v28 = vmul.f32 %v764_v3, %v1150_v13  ;;  %s251_s10 = scalar_lea.vmem %s1316_s6, %s927_s23 }
 0x27d   : > { %919 = vmatmul.mubr.msk.bf16.vlgmr.msra.gmra.mrb[4].mxu1 %vm375_vm5, %v917_v38 }
 0x27e   : > { %820 = vmatprep.mubr.bf16.mxu1 %v959_v35  ;;  %v629_v35 = vmul.f32 %v628_v6, %v1036_v7 }
 0x27f   : > { %834 = vperm.xlu0 %944, %v831_v41  }
 0x2e1   : > { %v616_v10 = vpop.permute.xlu0 %615  ;;  %v618_v11 = vpop.permute.xlu1 %617 }
 0x2e2   : > { %v619_v14 = vsel %vm336_vm6, %v616_v10, %v618_v11  ;;  %v620_v4 = vsel %vm336_vm6, %v618_v11, %v616_v10 }
 0x2e3   : > { %v621_v20 = vmul.f32 %v620_v4, %v1036_v7  ;;  %v622_v21 = vmul.f32 %v619_v14, %v1140_v63 }
 0x2e5   : > { %v639_v5 = vpack.c.bf16 %v629_v35, %v621_v20  ;;  %v752_v12 = vpop.permute.xlu0 %751  ;;  %v754_v23 = vpop.permute.xlu1 %753  ;;  %v640_v24 = vpack.c.bf16 %v630_v19, %v622_v21 }
 0x2e6   : > { %v755_v25 = vsel %vm483_vm7, %v752_v12, %v754_v23  ;;  %v756_v26 = vsel %vm483_vm7, %v754_v23, %v752_v12 }
 0x2e7   : > { %v757_v29 = vmul.f32 %v755_v25, %v1040_v8  ;;  %v758_v30 = vmul.f32 %v756_v26, %v1150_v13  ;;  %708 = vmatprep.subr.bf16.mxu0 %v640_v24 }
 0x2e8   : > { %709 = vmatpush1.bf16.msra.mxu0 %v639_v5 }
 0x2e9   : > { %v775_v31 = vpack.c.bf16 %v765_v27, %v757_v29  ;;  %v632_v32 = vpop.permute.xlu0 %631  ;;  %v634_v33 = vpop.permute.xlu1 %633  ;;  %v776_v34 = vpack.c.bf16 %v766_v28, %v758_v30 }
 0x2ea   : > { %v635_v39 = vsel %vm336_vm6, %v632_v32, %v634_v33  ;;  %v636_v40 = vsel %vm336_vm6, %v634_v33, %v632_v32 }
 0x2eb   : > { %v637_v42 = vmul.f32 %v636_v40, %v1036_v7  ;;  %v638_v43 = vmul.f32 %v635_v39, %v1140_v63  ;;  %788 = vmatprep.subr.bf16.mxu1 %v776_v34 }
 0x2ec   : > { %789 = vmatpush1.bf16.msra.mxu1 %v775_v31 }
 0x2ed   : > { %v641_v44 = vpack.c.bf16 %v637_v42, %v637_v42  ;;  %v642_v45 = vpack.c.bf16 %v638_v43, %v638_v43  ;;  %v768_v46 = vpop.permute.xlu0 %767  ;;  %v770_v47 = vpop.permute.xlu1 %769 }
 0x2ee   : > { %v771_v48 = vsel %vm483_vm7, %v768_v46, %v770_v47  ;;  %v772_v49 = vsel %vm483_vm7, %v770_v47, %v768_v46 }
 0x2ef   : > { %920 = vmatprep.subr.msk.bf16.mxu0 %vm379_vm4, %v642_v45  ;;  %v703_v17 = vsel %vm379_vm4, %v641_v44, 0  ;;  %v773_v7 = vmul.f32 %v771_v48, %v1040_v8  ;;  %v774_v63 = vmul.f32 %v772_v49, %v1150_v13  ;;  %v922_v8 = vld [vmem:[%s1314_s4 + $0x8] sm:$0xf] }
 0x2f0   : > { %711 = vmatpush1.bf16.msra.mxu0 %v703_v17 }
 0x2f1   : > { %v777_v18 = vpack.c.bf16 %v773_v7, %v773_v7  ;;  %v778_v15 = vpack.c.bf16 %v774_v63, %v774_v63 }
 0x2f3   : > { %921 = vmatmul.mubr.msk.bf16.vlgmr.msra.gmra.mrb[8].mxu0 %vm375_vm5, %v614_v50  ;;  %923 = vmatprep.subr.msk.bf16.mxu1 %vm379_vm4, %v778_v15  ;;  %v783_v9 = vsel %vm379_vm4, %v777_v18, 0 }
 0x2f4   : > { %791 = vmatpush1.bf16.msra.mxu1 %v783_v9 }
 0x2f7   : > { %924 = vmatmul.mubr.msk.bf16.vlgmr.msra.gmra.mrb[8].mxu1 %vm375_vm5, %v922_v8 }
 0x2fe   : > { %v835_v41 = vpop.permute.xlu0 %834 }
 0x350   : > { %v692_v13 = vpop.f32.mrb[4].mxu1 }
 0x351   : > { %v694_v16 = vpop.f32.mrb[5].mxu1 }
 0x352   : > { %v696_v51 = vpop.f32.mrb[6].mxu1 }
 0x353   : > { %v697_v52 = vpop.f32.mrb[7].mxu1 }
 0x3c6   : > { %v742_v53 = vpop.f32.mrb[8].mxu0 }
 0x3c7   : > { %v743_v54 = vadd.f32 %v742_v53, %v692_v13  ;;  %v744_v55 = vpop.f32.mrb[9].mxu0 }
 0x3c8   : > { %v745_v56 = vadd.f32 %v744_v55, %v694_v16  ;;  %v746_v57 = vpop.f32.mrb[10].mxu0 }
 0x3c9   : > { %v747_v36 = vpop.f32.mrb[11].mxu0 }
 0x3ca   : > { %v822_v58 = vpop.f32.mrb[8].mxu1 }
 0x3cb   : > { %v829_v37 = vadd.f32 %v822_v58, %v743_v54  ;;  %v824_v38 = vpop.f32.mrb[9].mxu1 }
 0x3cc   : > { %v830_v59 = vadd.f32 %v824_v38, %v745_v56  ;;  %v826_v60 = vpop.f32.mrb[10].mxu1 }
 0x3cd   : > { %v837_v61 = vadd.f32 %v835_v41, %v829_v37  ;;  %v827_v62 = vpop.f32.mrb[11].mxu1 }
 0x3ce   : > { %v838_v2 = vadd.f32 %v835_v41, %v830_v59 }
 0x3cf   : > { %v839_v6 = vadd.f32 %v837_v61, %v1011_v0 }
 0x3d0   : > { %v840_v10 = vadd.f32 %v838_v2, %v1017_v1 }
 0x3d1   : > { %v841_v11 = vmax.f32 %v839_v6, 0.0 }
 0x3d2   : > { %v842_v14 = vmax.f32 %v840_v10, 0.0 }
 0x3d3   : > { %843 = vst [vmem:[%s251_s10] sm:$0xff] %v841_v11 }
 0x3d4   : > { %844 = vst [vmem:[%s251_s10 + $0x8] sm:$0xff] %v842_v14 }
 0x3d5 PF: > { %s16_s21 = sadd.s32 1, %s951_s21  }
 0x3d6   : > { %p13_p4 = scmp.ge.s32.totalorder %s16_s21, 4  }
 0x3d8   :  { %15 = sbr.rel (!%p13_p4) target bundleno = 1 (0x1), region = 78 }

</bundles_post_ra>
